<compile_context>
chip_gen: v6e
topology: v6e:2x2x1
jax: 0.10.0
libtpu: 0.0.40
codegen_flags: <defaults>
</compile_context>

<pallas_src>
import functools

import numpy as np
import jax
import jax.numpy as jnp
from jax import lax
from jax.experimental import pallas as pl
from jax.experimental.pallas import tpu as pltpu


def _round_up(x, m):
    return ((x + m - 1) // m) * m


def _lse_w_kernel_class_major(x_ref, w_ref, out_ref, *, n_total, tile_n):
    """x: (C, TILE_N) class-major, w: (1, TILE_N) lane-major.
       Writes sum_n w_n * logsumexp(x[:, n]) for the valid columns."""
    x = x_ref[...].astype(jnp.float32)                                 # (C, TN)
    m = jnp.max(x, axis=0, keepdims=True)                              # (1, TN)
    se = jnp.sum(jnp.exp(x - m), axis=0, keepdims=True)                # (1, TN)
    lse = m + jnp.log(se)                                              # (1, TN)

    w = w_ref[...]                                                     # (1, TN) f32
    col0 = pl.program_id(0) * tile_n
    lane = lax.broadcasted_iota(jnp.int32, (1, tile_n), 1)
    valid = (col0 + lane) < n_total                                    # mask tail cols
    partial = jnp.sum(jnp.where(valid, lse * w, 0.0))                  # scalar

    out_ref[...] = jnp.broadcast_to(jnp.reshape(partial, (1, 1, 1)),
                                    out_ref.shape).astype(jnp.float32)


def _lse_w_kernel_row_major(x_ref, w_ref, out_ref, *, n_total, tile_n):
    """x: (TILE_N, C) row-major, w: (TILE_N, 1).
       Writes sum_n w_n * logsumexp(x[n, :]) for the valid rows."""
    x = x_ref[...].astype(jnp.float32)                                 # (TN, C)
    m = jnp.max(x, axis=1, keepdims=True)                              # (TN, 1)
    se = jnp.sum(jnp.exp(x - m), axis=1, keepdims=True)                # (TN, 1)
    lse = m + jnp.log(se)                                              # (TN, 1)

    w = w_ref[...]                                                     # (TN, 1) f32
    row0 = pl.program_id(0) * tile_n
    row = lax.broadcasted_iota(jnp.int32, (tile_n, 1), 0)
    valid = (row0 + row) < n_total                                     # mask tail rows
    partial = jnp.sum(jnp.where(valid, lse * w, 0.0))                  # scalar

    out_ref[...] = jnp.broadcast_to(jnp.reshape(partial, (1, 1, 1)),
                                    out_ref.shape).astype(jnp.float32)


def transition_sat_forward(inputs, targets, prev, adjustment, *, tile_n=None):
    """inputs: (N, C) float (f32 or bf16); targets, prev: (N,) int;
       adjustment: (C+1, C) float.  Returns the scalar mean-reduced loss."""
    n, c = inputs.shape
    targets = targets.astype(jnp.int32)
    prev = prev.astype(jnp.int32)

    # --- tiny scalar work done wrapper-side (removes in-kernel gather/pick) ---
    adj_f32 = adjustment.astype(jnp.float32)
    w = adj_f32[prev, targets]                                         # (N,) f32
    picked = jnp.take_along_axis(inputs.astype(jnp.float32),
                                 targets[:, None], axis=1)[:, 0]       # (N,) f32
    picked_w_sum = jnp.sum(picked * w)

    # --- per-generation VMEM budget (v5e/v6e 128 MiB, v7x 64 MiB physical) ---
    try:
        phys_vmem = int(getattr(pltpu.get_tpu_info(), "vmem_capacity_bytes"))
    except Exception:
        phys_vmem = 64 << 20                 # conservative (v7x per-TC)
    if phys_vmem >= (100 << 20):             # v5e / v6e
        budget_bytes = 40 << 20
        vmem_limit = 96 << 20
    else:                                    # v7x
        budget_bytes = 20 << 20
        vmem_limit = 32 << 20

    in_bytes = jnp.dtype(inputs.dtype).itemsize
    sub_q_in = max(8, 32 // in_bytes)        # sublane quantum: 8 f32 / 16 bf16 / 32 i8

    class_major = c < 128                    # small-C: put classes on sublanes

    if class_major:
        quantum = 128                        # tile_n lives on lanes
        # double-buffered bytes per batch column: logits (C padded to sublane
        # quantum, input dtype) + lane-major f32 weight row (8 sublanes).
        per_unit = 2 * (_round_up(c, sub_q_in) * in_bytes + 8 * 4)
    else:
        quantum = sub_q_in                   # tile_n lives on sublanes
        # double-buffered bytes per batch row: logits (C padded to 128 lanes,
        # input dtype) + (TILE_N, 1) f32 weight column padded to 128 lanes.
        per_unit = 2 * (_round_up(c, 128) * in_bytes + 128 * 4)

    if tile_n is None:
        tile_n = budget_bytes // per_unit
    tile_n = int(tile_n)
    cap = 1 << 15
    half = -(-n // 2)                        # >=2 grid blocks when possible (v7x 2 TCs)
    tile_n = min(tile_n, cap, _round_up(half, quantum))
    tile_n = max(quantum, (tile_n // quantum) * quantum)
    if tile_n >= n:
        tile_n = n                           # single full-extent block
    grid = pl.cdiv(n, tile_n)

    if class_major:
        x_arg = inputs.T                     # (C, N): batch fills all 128 lanes
        w_arg = w.reshape(1, n)              # lane-major weight row
        kernel = functools.partial(_lse_w_kernel_class_major,
                                   n_total=n, tile_n=tile_n)
        in_specs = [pl.BlockSpec((c, tile_n), lambda i: (0, i)),
                    pl.BlockSpec((1, tile_n), lambda i: (0, i))]
    else:
        x_arg = inputs                       # (N, C): classes already lane-dense
        w_arg = w.reshape(n, 1)
        kernel = functools.partial(_lse_w_kernel_row_major,
                                   n_total=n, tile_n=tile_n)
        in_specs = [pl.BlockSpec((tile_n, c), lambda i: (i, 0)),
                    pl.BlockSpec((tile_n, 1), lambda i: (i, 0))]

    partials = pl.pallas_call(
        kernel,
        out_shape=jax.ShapeDtypeStruct((grid, 8, 128), jnp.float32),
        grid=(grid,),
        in_specs=in_specs,
        out_specs=pl.BlockSpec((1, 8, 128), lambda i: (i, 0, 0)),
        compiler_params=pltpu.CompilerParams(
            dimension_semantics=("parallel",),
            vmem_limit_bytes=vmem_limit,
        ),
    )(x_arg, w_arg)

    # Every lane of a block holds the same partial; read lane (0, 0) of each.
    lse_w_sum = jnp.sum(partials[:, 0, 0])
    # loss = -mean( w * (picked - lse) ) = (sum(w*lse) - sum(w*picked)) / N
    return (lse_w_sum - picked_w_sum) / n


def build_adjustment(class_prior, tau):
    """Deterministic re-creation of TransitionSat.__init__ + gain():
       G[j, j, i] = 1 / class_prior[j]  for every i in [0, C]
       D = diag(G[:, :, i]) ** tau ; norm_D = D * C / sum(D)
       adjustment = stack of norm_D rows -> (C+1, C)."""
    c = class_prior.shape[0]
    d = (1.0 / class_prior) ** tau
    norm_d = d * c / jnp.sum(d)
    return jnp.tile(norm_d[None, :], (c + 1, 1))


def _reference_loss(inputs, targets, prev, adjustment):
    new_weight = adjustment[prev]                                      # (N, C)
    log_probs = jax.nn.log_softmax(inputs, axis=1)
    one_hot = jax.nn.one_hot(targets, inputs.shape[1], dtype=jnp.float32)
    return -jnp.mean(jnp.sum(one_hot * log_probs * new_weight, axis=1))


if __name__ == "__main__":
    key = jax.random.PRNGKey(0)
    k_prior, k_inputs, k_targets, k_prev, k2_prior, k2_inputs, k2_targets, k2_prev = (
        jax.random.split(key, 8))

    # ---- case 1: small C (class-major path), N not a multiple of the tile ----
    num_classes = 19      # C (action-segmentation sized label set)
    batch = 300           # N -> 3 blocks of 128 lanes, tail masking exercised
    tau = 1.0             # stands in for args.tau

    class_prior = jax.nn.softmax(jax.random.normal(k_prior, (num_classes,)))
    adjustment = build_adjustment(class_prior, tau)                    # (C+1, C)

    inputs = jax.random.normal(k_inputs, (batch, num_classes), dtype=jnp.float32)
    targets = jax.random.randint(k_targets, (batch,), 0, num_classes, dtype=jnp.int32)
    prev = jax.random.randint(k_prev, (batch,), 0, num_classes + 1, dtype=jnp.int32)

    loss = transition_sat_forward(inputs, targets, prev, adjustment, tile_n=128)
    loss = jax.block_until_ready(loss)
    ref = _reference_loss(inputs, targets, prev, adjustment)
    np.testing.assert_allclose(np.asarray(loss), np.asarray(ref),
                               rtol=1e-4, atol=1e-5)

    # ---- case 2: large C (row-major path), auto tile sizing ----
    num_classes2 = 256
    batch2 = 64
    class_prior2 = jax.nn.softmax(jax.random.normal(k2_prior, (num_classes2,)))
    adjustment2 = build_adjustment(class_prior2, tau)
    inputs2 = jax.random.normal(k2_inputs, (batch2, num_classes2), dtype=jnp.float32)
    targets2 = jax.random.randint(k2_targets, (batch2,), 0, num_classes2, dtype=jnp.int32)
    prev2 = jax.random.randint(k2_prev, (batch2,), 0, num_classes2 + 1, dtype=jnp.int32)

    loss2 = transition_sat_forward(inputs2, targets2, prev2, adjustment2)
    loss2 = jax.block_until_ready(loss2)
    ref2 = _reference_loss(inputs2, targets2, prev2, adjustment2)
    np.testing.assert_allclose(np.asarray(loss2), np.asarray(ref2),
                               rtol=1e-4, atol=1e-5)

    print("KERNEL_OK")
</pallas_src>

<mosaic_0001>
module attributes {stable_mosaic.version = 11 : i64} {
  func.func @_lse_w_kernel_class_major(%arg0: i32, %arg1: memref<19x128xf32, #tpu.memory_space<vmem>>, %arg2: memref<1x128xf32, #tpu.memory_space<vmem>>, %arg3: memref<1x8x128xf32, #tpu.memory_space<vmem>>) attributes {dimension_semantics = [#tpu.dimension_semantics<parallel>], iteration_bounds = array<i64: 3>, scalar_prefetch = 0 : i64, scratch_operands = 0 : i64, tpu.core_type = #tpu.core_type<tc>, window_params = [{transform_indices = @transform_0, window_bounds = array<i64: 19, 128>}, {transform_indices = @transform_1, window_bounds = array<i64: 1, 128>}, {transform_indices = @transform_2, window_bounds = array<i64: 1, 8, 128>}]} {
    %c0 = arith.constant 0 : index
    %c0_0 = arith.constant 0 : index
    %0 = vector.load %arg1[%c0, %c0_0] : memref<19x128xf32, #tpu.memory_space<vmem>>, vector<19x128xf32>
    %cst = arith.constant dense<0xFF800000> : vector<128xf32>
    %1 = vector.multi_reduction <maximumf>, %0, %cst [0] : vector<19x128xf32> to vector<128xf32>
    %2 = vector.shape_cast %1 : vector<128xf32> to vector<1x128xf32>
    %3 = vector.broadcast %2 : vector<1x128xf32> to vector<19x128xf32>
    %4 = arith.subf %0, %3 : vector<19x128xf32>
    %5 = math.exp %4 : vector<19x128xf32>
    %cst_1 = arith.constant dense<0.000000e+00> : vector<128xf32>
    %6 = vector.multi_reduction <add>, %5, %cst_1 [0] : vector<19x128xf32> to vector<128xf32>
    %7 = vector.shape_cast %6 : vector<128xf32> to vector<1x128xf32>
    %8 = math.log %7 : vector<1x128xf32>
    %9 = arith.addf %2, %8 : vector<1x128xf32>
    %c0_2 = arith.constant 0 : index
    %c0_3 = arith.constant 0 : index
    %10 = vector.load %arg2[%c0_2, %c0_3] : memref<1x128xf32, #tpu.memory_space<vmem>>, vector<1x128xf32>
    %c128_i32 = arith.constant 128 : i32
    %11 = arith.muli %arg0, %c128_i32 : i32
    %12 = tpu.iota {dimensions = array<i32: 1>} : vector<1x128xi32>
    %13 = vector.broadcast %11 : i32 to vector<1x128xi32>
    %14 = arith.addi %13, %12 : vector<1x128xi32>
    %c300_i32 = arith.constant 300 : i32
    %15 = vector.broadcast %c300_i32 : i32 to vector<1x128xi32>
    %16 = arith.cmpi slt, %14, %15 : vector<1x128xi32>
    %17 = arith.mulf %9, %10 : vector<1x128xf32>
    %cst_4 = arith.constant 0.000000e+00 : f32
    %18 = vector.broadcast %cst_4 : f32 to vector<1x128xf32>
    %19 = arith.select %16, %17, %18 : vector<1x128xi1>, vector<1x128xf32>
    %20 = vector.shape_cast %19 : vector<1x128xf32> to vector<1x1x128xf32>
    %cst_5 = arith.constant dense<0.000000e+00> : vector<1xf32>
    %21 = vector.multi_reduction <add>, %20, %cst_5 [1, 2] : vector<1x1x128xf32> to vector<1xf32>
    %22 = vector.shape_cast %21 : vector<1xf32> to vector<1x1x1xf32>
    %23 = vector.extract %22[0, 0, 0] : f32 from vector<1x1x1xf32>
    %24 = vector.broadcast %23 : f32 to vector<1x1x1xf32>
    %25 = vector.shape_cast %24 : vector<1x1x1xf32> to vector<1x1x1xf32>
    %26 = vector.broadcast %25 : vector<1x1x1xf32> to vector<1x8x128xf32>
    %c0_6 = arith.constant 0 : index
    %c0_7 = arith.constant 0 : index
    %c0_8 = arith.constant 0 : index
    %27 = vector.load %arg3[%c0_6, %c0_7, %c0_8] : memref<1x8x128xf32, #tpu.memory_space<vmem>>, vector<1x8x128xf32>
    tpu.vector_store %arg3[%c0_6, %c0_7, %c0_8], %26 {strides = array<i32>} : memref<1x8x128xf32, #tpu.memory_space<vmem>>, vector<1x8x128xf32>,
    return
  }
  func.func @transform_0(%arg0: i32) -> (i32, i32) {
    %c0_i32 = arith.constant 0 : i32
    %c0_i32_0 = arith.constant 0 : i32
    return %c0_i32, %arg0 : i32, i32
  }
  func.func @transform_1(%arg0: i32) -> (i32, i32) {
    %c0_i32 = arith.constant 0 : i32
    %c0_i32_0 = arith.constant 0 : i32
    return %c0_i32, %arg0 : i32, i32
  }
  func.func @transform_2(%arg0: i32) -> (i32, i32, i32) {
    %c0_i32 = arith.constant 0 : i32
    %c0_i32_0 = arith.constant 0 : i32
    %c0_i32_1 = arith.constant 0 : i32
    return %arg0, %c0_i32, %c0_i32_0 : i32, i32, i32
  }
}

</mosaic_0001>

<bundles_post_ra>
// kernel: tpu_custom_call.1
= control target key start
LH: loop header
LB: loop body
LE: loop exit
PB: predicated region body
PF: predicated region fallthrough
CT: control target
= control target key end

     0   :  { %7 = vsyncpa [#allocation3], 0  ;;  %s778_s0 = inlined_call_operand.hbm [shape: f32[19,300], index: 0, kind: input, shape index: {}]   ;;  %s779_s1 = inlined_call_operand.hbm [shape: f32[1,300], index: 1, kind: input, shape index: {}]   ;;  %s780_s2 = inlined_call_operand.hbm [shape: f32[3,8,128], index: 2, kind: output, shape index: {}]  }
   0x1   :  { %9 = vsyncpa [#allocation3 + $0x1], 0 }
   0x2   :  { %10 = vsyncpa [#allocation6], 0 }
   0x3   :  { %12 = vsyncpa [#allocation6 + $0x1], 0 }
   0x4   :  { %13 = vsyncpa [#allocation4], 0 }
   0x5   :  { %15 = vsyncpa [#allocation4 + $0x1], 0  ;;  %s580_s9 = smov 0   ;;  %s582_s10 = smov 0  }
   0x6   :  { %s584_s11 = smov 0   ;;  %s586_s12 = smov 0  }
   0x7 LB: > { %s601_s13 = sadd.s32 4294967295, %s557_s12   ;;  %s355_s14 = sadd.s32 4294967294, %s557_s12   ;;  %s557_s12 = sphi %s586_s12, %s796_s12   ;;  %s553_s11 = sphi %s584_s11, %s795_s11   ;;  %s549_s10 = sphi %s582_s10, %s794_s10   ;;  %s545_s9 = sphi %s580_s9, %s793_s9  }
   0x8   : > { %s605_s15 = sadd.s32 1, %s557_s12   ;;  %s28_s16 = sadd.s32 1, %s553_s11 }
   0x9   : > { %s25_s17 = ssub.s32 %s557_s12, %s605_s15  ;;  %p35_p0 = scmp.ne.s32.totalorder %s553_s11, %s549_s10 }
   0xa   : > { %p26_p1 = scmp.eq.s32.totalorder %s25_s17, 0  ;;  %p36_p2 = scmp.eq.s32.totalorder %s557_s12, 0 }
   0xb   : > { %p41_p3 = scmp.ne.s32.totalorder %s549_s10, %s545_s9  ;;  %p42_p4 = scmp.eq.s32.totalorder %s601_s13, 0 }
   0xc   : > { %s617_s18 = scalar_select %p26_p1, %s553_s11, %s28_s16  }
   0xd   : > { %p37_p5 = por %p36_p2, %p35_p0  ;;  %p619_p6 = por %p42_p4, %p41_p3 }
   0xe   : > { %p91_p7 = scmp.eq.s32.totalorder %s601_s13, 2  ;;  %p97_p8 = scmp.eq.s32.totalorder %s355_s14, 2 }
   0xf   : > { %s783_s19 = scalar_select %p619_p6, 1, 0 }
  0x10   : > { %p388_p9 = scmp.lt.s32.totalorder %s557_s12, 3  ;;  %p625_p10 = por %p91_p7, %p35_p0 }
  0x11   : > { %p629_p11 = por %p97_p8, %p41_p3  ;;  %s634_s22 = sand.u32 1, %s553_s11  }
  0x12   : > { %s784_s20 = scalar_select %p625_p10, 1, 0 }
  0x13   : > { %s785_s21 = scalar_select %p629_p11, 1, 0 }
  0x14   : > { %s358_s23 = sshll.u32 %s557_s12, 7  ;;  %s367_s24 = smul.u32 24, %s634_s22 }
  0x15   : > { %s641_s27 = scalar_lea.hbm %s778_s0, %s358_s23  ;;  %p643_p12 = pnand %p388_p9, %p37_p5 }
  0x16   : > { %s121_s29 = scalar_lea.vmem [#allocation2], %s367_s24  ;;  %s118_s3 = scalar_lea.sflag [#allocation3], %s634_s22 }
  0x17   : > { %s127_s30 = sshll.u32 %s121_s29, 4  ;;  %s433_s4 = scalar_lea.hbm %s641_s27, 384  ;;  %s647_s30 = int_to_ptr.vmem [resolvable:$true] %s127_s30 }
  0x18   : > { %p434_p0 = scmp.ne.s32.totalorder %s641_s27, %s433_s4  ;;  %p435_p1 = pneg %p643_p12 }
  0x19   : > { %s438_s7 = scalar_lea.hbm %s778_s0, 1152  ;;  %p439_p4 = scmp.lt.s32.totalorder %s641_s27, %s778_s0 }
  0x1a   : > { %p436_p2 = pnand %p435_p1, %p434_p0  ;;  %p440_p5 = scmp.lt.s32.totalorder %s438_s7, %s433_s4 }
  0x1c   : > { %p437_p3 = pneg %p436_p2  ;;  %p441_p7 = por %p440_p5, %p439_p4 }
  0x1e   : > { %p442_p8 = pnand %p441_p7, %p437_p3 }
  0x20   : > { %445 = shalt.err (!%p442_p8)
}
  0x21   : > { %s446_s16 = scalar_lea.vmem %s647_s30, 384  ;;  %s559_s17 = smov [#allocation2]  }
  0x22   : > { %p447_p9 = scmp.ne.s32.totalorder %s647_s30, %s446_s16  ;;  %s451_s23 = sshll.u32 %s559_s17, 4  ;;  %s452_s23 = int_to_ptr.vmem [resolvable:$false] %s451_s23 }
  0x23   : > { %s453_s24 = scalar_lea.vmem %s452_s23, 768  ;;  %p454_p13 = scmp.lt.s32.totalorder %s647_s30, %s452_s23 }
  0x24   : > { %p449_p0 = pnand %p447_p9, %p435_p1  ;;  %p455_p11 = scmp.lt.s32.totalorder %s453_s24, %s446_s16 }
  0x26   : > { %p450_p2 = pneg %p449_p0  ;;  %p456_p10 = por %p455_p11, %p454_p13 }
  0x28   : > { %p457_p4 = pnand %p456_p10, %p450_p2 }
  0x2a   : > { %460 = shalt.err (!%p457_p4)
}
  0x2b   : > { %s560_s25 = smov 384   ;;  %s561_s26 = smov 128  }
  0x2c   : > { %s562_s29 = smov 8   ;;  %p152_p3 = scmp.lt.s32.totalorder %s557_s12, 4 }
  0x2d   : > { %380 = dma.hbm_to_vmem [thread:$0]  (!%p643_p12), %s641_s27, 384, %s647_s30, %s118_s3, %s560_s25, %s561_s26, %s562_s29  }
  0x2e   : > { %s359_s4 = sshll.u32 %s557_s12, 4  ;;  %p787_p10 = scmp.ge.s32.totalorder %s557_s12, 1 }
  0x2f   : > { %s688_s8 = scalar_lea.hbm %s779_s1, %s359_s4  ;;  %s140_s14 = scalar_lea.vmem [#allocation5], %s634_s22 }
  0x30   : > { %p681_p11 = pnand %p787_p10, %p152_p3  ;;  %s147_s16 = sshll.u32 %s140_s14, 4  ;;  %s148_s16 = int_to_ptr.vmem [resolvable:$true] %s147_s16 }
  0x31   : > { %s138_s17 = scalar_lea.sflag [#allocation6], %s634_s22  ;;  %s461_s27 = scalar_lea.hbm %s688_s8, 16 }
  0x32   : > { %s788_s5 = scalar_select %p681_p11, 1, 0 }
  0x33   : > { %p462_p13 = scmp.ne.s32.totalorder %s688_s8, %s461_s27  ;;  %s466_s23 = scalar_lea.hbm %s779_s1, 48 }
  0x34   : > { %p467_p8 = scmp.lt.s32.totalorder %s688_s8, %s779_s1  ;;  %p468_p9 = scmp.lt.s32.totalorder %s466_s23, %s461_s27 }
  0x35   : > { %p464_p5 = pnand %p462_p13, %p435_p1 }
  0x36   : > { %p469_p0 = por %p468_p9, %p467_p8 }
  0x37   : > { %p465_p7 = pneg %p464_p5 }
  0x39   : > { %p470_p2 = pnand %p469_p0, %p465_p7 }
  0x3b   : > { %473 = shalt.err (!%p470_p2)
}
  0x3c   : > { %s474_s26 = scalar_lea.vmem %s148_s16, 16  ;;  %s563_s22 = smov [#allocation5]  }
  0x3d   : > { %p475_p4 = scmp.ne.s32.totalorder %s148_s16, %s474_s26  ;;  %s479_s29 = sshll.u32 %s563_s22, 4  ;;  %s480_s29 = int_to_ptr.vmem [resolvable:$false] %s479_s29 }
  0x3e   : > { %s481_s4 = scalar_lea.vmem %s480_s29, 32  ;;  %p482_p13 = scmp.lt.s32.totalorder %s148_s16, %s480_s29 }
  0x3f   : > { %p477_p3 = pnand %p475_p4, %p435_p1  ;;  %p483_p5 = scmp.lt.s32.totalorder %s481_s4, %s474_s26 }
  0x41   : > { %p478_p10 = pneg %p477_p3  ;;  %p484_p6 = por %p483_p5, %p482_p13 }
  0x43   : > { %p485_p11 = pnand %p484_p6, %p478_p10 }
  0x45   : > { %488 = shalt.err (!%p485_p11)
}
  0x46   : > { %383 = dma.hbm_to_vmem [thread:$0]  (!%p643_p12), %s688_s8, 16, %s148_s16, %s138_s17  }
  0x47   : > { %p789_p7 = scmp.ne.s32.totalorder %s788_s5, 0 }
  0x48   : > { %s713_s6 = sand.u32 (!%p789_p7), 1, %s549_s10   ;;  %p790_p1 = scmp.ne.s32.totalorder (!%p789_p7), %s783_s19, 0 }
  0x49   : > { %156 = sbr.rel (%p789_p7) target bundleno = 369 (0x171), region = 28  ;;  %s159_s14 = scalar_lea.sflag (!%p789_p7), [#allocation3], %s713_s6 }
  0x4a   : > { %s368_s7 = smul.u32 (!%p789_p7), 24, %s713_s6 }
  0x4c   : > { %s162_s27 = scalar_lea.vmem (!%p789_p7), [#allocation2], %s368_s7 }
  0x4e   : > { %532 = dma.done.wait (%p790_p1), %s159_s14, 384  }
  0x4f   : > { %534 = vsyncadd (%p790_p1), %s159_s14, 4294966912  ;;  %s168_s28 = scalar_lea.sflag [#allocation6], %s713_s6  ;;  %s170_s5 = scalar_lea.vmem [#allocation5], %s713_s6 }
  0x50   : > { %536 = dma.done.wait (%p790_p1), %s168_s28, 16  }
  0x51   : > { %538 = vsyncadd (%p790_p1), %s168_s28, 4294967280  ;;  %vm198_vm0 = vcmask 1042432   ;;  %v195_v0 = vld [vmem:[%s162_s27] sm:$0xff]  ;;  %v196_v1 = vld [vmem:[%s162_s27 + $0x8] sm:$0xff]  ;;  %v231_v30 = vlaneseq  ;;  %s362_s19 = sshll.u32 %s601_s13, 7  ;;  %vm238_vm2 = vcmask 1040384  }
  0x52   : > { %v197_v2 = vld [vmem:[%s162_s27 + $0x10] sm:$0x7]  ;;  %v200_v4 = vmax.f32 %v195_v0, %v196_v1  ;;  %v233_v32 = vstv %s362_s19  ;;  %v229_v36 = vld [vmem:[%s170_s5] sm:$0x1]  ;;  %s361_s13 = sshll.u32 %s713_s6, 3  ;;  %s736_s3 = scalar_lea.hbm %s780_s2, %s362_s19 }
  0x53   : > { %v199_v3 = vsel %vm198_vm0, %v197_v2, -inf  ;;  %v232_v31 = vand.u32 127, %v231_v30  ;;  %s194_s8 = scalar_lea.vmem [#allocation7], %s361_s13  ;;  %s252_s24 = scalar_lea.sflag [#allocation4], %s713_s6 }
  0x54   : > { %v201_v5 = vmax.f32 %v200_v4, %v199_v3  ;;  %s265_s16 = sshll.u32 %s194_s8, 4  ;;  %p791_p12 = scmp.ne.s32.totalorder %s784_s20, 0  ;;  %s738_s16 = int_to_ptr.vmem [resolvable:$true] %s265_s16 }
  0x55   : > { %v234_v34 = vadd.s32 %v233_v32, %v232_v31  ;;  %s489_s25 = scalar_lea.vmem %s738_s16, 128  ;;  %s564_s26 = smov [#allocation7]  }
  0x56   : > { %v202_v6 = vrot.slane %v201_v5, 4  ;;  %p490_p6 = scmp.ne.s32.totalorder %s738_s16, %s489_s25  ;;  %s493_s22 = sshll.u32 %s564_s26, 4  ;;  %s494_s22 = int_to_ptr.vmem [resolvable:$false] %s493_s22 }
  0x57   : > { %vm235_vm1 = vcmp.lt.s32.totalorder %v234_v34, 300  ;;  %s495_s29 = scalar_lea.vmem %s494_s22, 256  ;;  %p496_p9 = scmp.lt.s32.totalorder %s738_s16, %s494_s22 }
  0x58   : > { %v203_v7 = vmax.f32 %v201_v5, %v202_v6  ;;  %p491_p11 = pnand %p490_p6, %p791_p12  ;;  %p497_p0 = scmp.lt.s32.totalorder %s495_s29, %s489_s25 }
  0x5a   : > { %v204_v8 = vrot.slane %v203_v7, 2  ;;  %p492_p8 = pneg %p491_p11  ;;  %p498_p2 = por %p497_p0, %p496_p9 }
  0x5c   : > { %v205_v9 = vmax.f32 %v203_v7, %v204_v8  ;;  %p499_p4 = pnand %p498_p2, %p492_p8 }
  0x5e   : > { %v206_v10 = vrot.slane %v205_v9, 1 }
  0x60   : > { %v207_v11 = vmax.f32 %v205_v9, %v206_v10 }
  0x62   : > { %v208_v12 = vsub.f32 %v195_v0, %v207_v11  ;;  %v209_v13 = vsub.f32 %v196_v1, %v207_v11  ;;  %v210_v14 = vsub.f32 %v197_v2, %v207_v11 }
  0x64   : > { %v211_v15 = vmul.f32 1.442695, %v208_v12  ;;  %v213_v16 = vmul.f32 1.442695, %v209_v13  ;;  %v215_v17 = vmul.f32 1.442695, %v210_v14 }
  0x66   : > { %425 = vpow2.f32 %v211_v15 }
  0x67   : > { %427 = vpow2.f32 %v213_v16 }
  0x68   : > { %429 = vpow2.f32 %v215_v17 }
  0x73   : > { %v426_v18 = vpop.eup %425 }
  0x74   : > { %v428_v19 = vpop.eup %427 }
  0x75   : > { %v430_v20 = vpop.eup %429  ;;  %v217_v21 = vadd.f32 %v428_v19, %v426_v18 }
  0x76   : > { %v218_v22 = vsel %vm198_vm0, %v430_v20, 0.0 }
  0x77   : > { %v219_v23 = vadd.f32 %v218_v22, %v217_v21 }
  0x79   : > { %v220_v24 = vrot.slane %v219_v23, 4 }
  0x7b   : > { %v221_v25 = vadd.f32 %v220_v24, %v219_v23 }
  0x7d   : > { %v222_v26 = vrot.slane %v221_v25, 2 }
  0x7f   : > { %v223_v27 = vadd.f32 %v222_v26, %v221_v25 }
  0x81   : > { %v224_v28 = vrot.slane %v223_v27, 1 }
  0x83   : > { %v225_v29 = vadd.f32 %v224_v28, %v223_v27 }
  0x85   : > { %431 = vlog2.f32 %v225_v29 }
  0x92   : > { %v432_v33 = vpop.eup %431 }
  0x93   : > { %v227_v35 = vmul.f32 0.6931472, %v432_v33 }
  0x95   : > { %v228_v37 = vadd.f32 %v227_v35, %v207_v11 }
  0x97   : > { %v236_v38 = vmul.f32 %v229_v36, %v228_v37 }
  0x99   : > { %v237_v39 = vsel %vm235_vm1, %v236_v38, 0.0 }
  0x9a   : > { %v239_v40 = vsel %vm238_vm2, %v237_v39, 0.0 }
  0x9b   : > { %240 = vadd.xlane.f32.xlu0 %v239_v40 }
 0x124   : > { %v241_v41 = vpop.xlane.xlu0 %240 }
 0x125   : > { %v242_v42 = vrot.slane %v241_v41, 4 }
 0x127   : > { %v243_v43 = vadd.f32 %v242_v42, %v241_v41 }
 0x129   : > { %v244_v44 = vrot.slane %v243_v43, 2 }
 0x12b   : > { %v245_v45 = vadd.f32 %v244_v44, %v243_v43 }
 0x12d   : > { %v246_v46 = vrot.slane %v245_v45, 1 }
 0x12f   : > { %v247_v47 = vadd.f32 %v246_v46, %v245_v45 }
 0x131   : > { %369 = vpush %v247_v47 }
 0x162   : > { %s370_s23 = spop %369 }
 0x163   : > { %v249_v48 = vstv %s370_s23 }
 0x164   : > { %250 = vst [vmem:[%s194_s8] sm:$0xff] %v249_v48 }
 0x165   : > { %502 = shalt.err (!%p499_p4)
}
 0x166   : > { %s503_s4 = scalar_lea.hbm %s736_s3, 128  ;;  %s507_s14 = scalar_lea.hbm %s780_s2, 384 }
 0x167   : > { %p504_p3 = scmp.ne.s32.totalorder %s736_s3, %s503_s4  ;;  %p508_p5 = scmp.lt.s32.totalorder %s736_s3, %s780_s2 }
 0x168   : > { %p509_p7 = scmp.lt.s32.totalorder %s507_s14, %s503_s4 }
 0x169   : > { %p505_p10 = pnand %p504_p3, %p791_p12 }
 0x16a   : > { %p510_p1 = por %p509_p7, %p508_p5 }
 0x16b   : > { %p506_p13 = pneg %p505_p10 }
 0x16d   : > { %p511_p6 = pnand %p510_p1, %p506_p13 }
 0x16f   : > { %514 = shalt.err (!%p511_p6)
}
 0x170   : > { %375 = dma.vmem_to_hbm [thread:$0]  (%p791_p12), %s738_s16, 128, %s736_s3, %s252_s24  }
 0x171 PF: > { %p389_p11 = scmp.ge.s32.totalorder %s557_s12, 2  ;;  %s277_s5 = sand.u32 1, %s545_s9  }
 0x172   : > { %p792_p8 = scmp.ne.s32.totalorder %s785_s21, 0  ;;  %s278_s19 = scalar_lea.sflag [#allocation4], %s277_s5 }
 0x174   : > { %p385_p9 = pnand %p389_p11, %p792_p8 }
 0x176   : > { %p386_p0 = pneg %p385_p9 }
 0x178   : > { %540 = dma.done.wait (%p386_p0), %s278_s19, 128  }
 0x179   : > { %542 = vsyncadd (%p386_p0), %s278_s19, 4294967168  ;;  %p18_p2 = scmp.ge.s32.totalorder %s605_s15, 5   ;;  %s793_s9 = smov %s549_s10 }
 0x17a   : > { %s794_s10 = smov %s553_s11  ;;  %s795_s11 = smov %s617_s18 }
 0x17b   : > { %s796_s12 = smov %s605_s15  ;;  %20 = sbr.rel (!%p18_p2) target bundleno = 7 (0x7), region = 86 }
 0x180   :  { %283 = vsyncpa [#allocation3], 1 }
 0x181   :  { %285 = vsyncpa [#allocation3 + $0x1], 1 }
 0x182   :  { %286 = vsyncpa [#allocation6], 1 }
 0x183   :  { %288 = vsyncpa [#allocation6 + $0x1], 1 }
 0x184   :  { %289 = vsyncpa [#allocation4], 1 }
 0x185   :  { %291 = vsyncpa [#allocation4 + $0x1], 1 }

</bundles_post_ra>
